<compile_context>
chip_gen: v5e
topology: v5e:2x2
jax: 0.10.0
libtpu: 0.0.40
codegen_flags: <defaults>
</compile_context>

<pallas_src>
import jax
import jax.numpy as jnp
from jax import lax
from jax.experimental import pallas as pl
from jax.experimental.pallas import tpu as pltpu


def _imha_kernel(q_ref, k_ref, v_ref, wqa_ref, wka_ref, wv_ref, wo_ref,
                 out_ref, attn_ref):
    # Per-grid-step refs (one batch tile of `bt` rows):
    #   q_ref/k_ref/v_ref : (bt, S, d_model)   bf16, VMEM
    #   wqa_ref/wka_ref   : (d_model, H*d_k)   bf16 (fused per-head projections)
    #   wv_ref            : (d_model, d_v)     bf16
    #   wo_ref            : (d_v, d_model)     bf16
    #   out_ref           : (bt, S, d_model)   f32
    #   attn_ref          : (H, bt, S, S)      f32 (or bf16 if attn_dtype=bf16)
    H = attn_ref.shape[0]
    bt, S, d_model = q_ref.shape
    d_k = wqa_ref.shape[1] // H
    d_v = wv_ref.shape[1]

    scale = 1.0 / jnp.sqrt(jnp.float32(d_k))
    inv_h = 1.0 / jnp.float32(H)

    # ---- Flattened (bt*S)-row projections: one lane-dense MXU matmul per weight. ----
    # (merging leading dims only -> layout-preserving reshape, no relayout)
    q2 = q_ref[...].reshape(bt * S, d_model)
    k2 = k_ref[...].reshape(bt * S, d_model)
    v2 = v_ref[...].reshape(bt * S, d_model)

    qs_all = jnp.dot(q2, wqa_ref[...], preferred_element_type=jnp.float32)   # (bt*S, H*d_k)
    ks_all = jnp.dot(k2, wka_ref[...], preferred_element_type=jnp.float32)   # (bt*S, H*d_k)
    vs_all = jnp.dot(v2, wv_ref[...], preferred_element_type=jnp.float32)    # (bt*S, d_v)

    # Fold 1/sqrt(d_k) into qs (bt*S*d_model elements instead of H*bt*S^2).
    qsb = (qs_all * scale).astype(jnp.bfloat16)
    ksb = ks_all.astype(jnp.bfloat16)
    vsb = vs_all.astype(jnp.bfloat16)

    # ---- Per (row, head) scores + softmax.  All heads share vs, so
    #      mean_h(attn_h @ vs) == (mean_h attn_h) @ vs  -> only accumulate attn here. ----
    mean_attns = []
    for i in range(bt):                       # small & static -> unrolled
        attn_sum = jnp.zeros((S, S), jnp.float32)
        for h in range(H):                    # small & static -> unrolled
            qh = qsb[i * S:(i + 1) * S, h * d_k:(h + 1) * d_k]
            kh = ksb[i * S:(i + 1) * S, h * d_k:(h + 1) * d_k]
            # Contract minor dims directly (no ks.T materialization).
            scores = lax.dot_general(qh, kh, (((1,), (1,)), ((), ())),
                                     preferred_element_type=jnp.float32)     # (S, S)
            # numerically stable softmax; EXACT normalization since attn is the
            # user-facing interpretability output (rows sum to 1 up to f32 rounding).
            scores = scores - jnp.max(scores, axis=-1, keepdims=True)
            e = jnp.exp(scores)
            attn = e * (1.0 / jnp.sum(e, axis=-1, keepdims=True))
            attn_ref[h, i] = attn.astype(attn_ref.dtype)
            attn_sum = attn_sum + attn        # VPU add, replaces a per-head MXU matmul
        mean_attns.append(attn_sum * inv_h)

    # ---- One batched A·V matmul per grid step + one fused output projection. ----
    mean_attn = jnp.stack(mean_attns, axis=0).astype(jnp.bfloat16)           # (bt, S, S)
    vs_b = vsb.reshape(bt, S, d_v)                                           # (bt, S, d_v)
    head_mean = jnp.einsum('bqk,bkd->bqd', mean_attn, vs_b,
                           preferred_element_type=jnp.float32)               # (bt, S, d_v)
    head2 = head_mean.reshape(bt * S, d_v).astype(jnp.bfloat16)
    out2 = jnp.dot(head2, wo_ref[...], preferred_element_type=jnp.float32)   # (bt*S, d_model)
    out_ref[...] = out2.reshape(bt, S, d_model)


def _vmem_bytes_per_step(bt, S, d_model, H, d_k, d_v, attn_bytes):
    """Rough per-grid-step VMEM footprint (double-buffered blocks + intermediates)."""
    act = 3 * bt * S * d_model * 2                                   # q, k, v (bf16)
    attn = H * bt * S * S * attn_bytes                               # attn out block
    out = bt * S * d_model * 4                                       # out block (f32)
    wts = (2 * d_model * H * d_k + d_model * d_v + d_v * d_model) * 2
    inter = bt * S * (2 * H * d_k + d_v + d_model) * 4 + bt * S * S * 4
    return 2 * (act + attn + out + wts) + inter


_VMEM_BUDGET = 40 * 1024 * 1024   # conservative: leaves headroom on v7x (64 MiB physical)


def _pick_bt(B, S, d_model, H, d_k, d_v, attn_bytes):
    """Largest batch tile dividing B with >= 2 grid steps (megacore) under VMEM budget."""
    best = 1
    for bt in range(1, B):
        if B % bt != 0 or B // bt < 2:
            continue
        if _vmem_bytes_per_step(bt, S, d_model, H, d_k, d_v, attn_bytes) <= _VMEM_BUDGET:
            best = bt
    return best


def interpretable_mha(q, k, v, wq, wk, wv, wo, *, bt=None, attn_dtype=jnp.float32):
    """Pallas-backed forward. Returns (outputs, attn) like the PyTorch module.

    q, k, v    : (B, S, d_model)
    wq, wk     : (H, d_model, d_k) per-head projection weights (x @ W layout)
    wv         : (d_model, d_v)    shared value projection
    wo         : (d_v, d_model)    output projection
    bt         : batch rows per grid step (None -> auto, keeps grid >= 2 for megacore)
    attn_dtype : dtype of the emitted attention (bf16 halves the dominant HBM writeback)
    """
    B, S, d_model = q.shape
    H, _, d_k = wq.shape
    d_v = wv.shape[1]
    attn_bytes = jnp.dtype(attn_dtype).itemsize

    if bt is None:
        bt = _pick_bt(B, S, d_model, H, d_k, d_v, attn_bytes)
    assert B % bt == 0, "batch tile must divide batch"

    # Fuse per-head projections: head h occupies columns [h*d_k, (h+1)*d_k).
    wq_all = jnp.transpose(wq, (1, 0, 2)).reshape(d_model, H * d_k).astype(jnp.bfloat16)
    wk_all = jnp.transpose(wk, (1, 0, 2)).reshape(d_model, H * d_k).astype(jnp.bfloat16)
    wvb = wv.astype(jnp.bfloat16)
    wob = wo.astype(jnp.bfloat16)

    # bf16 MXU operands (f32 accumulation inside the kernel).
    qb = q.astype(jnp.bfloat16)
    kb = k.astype(jnp.bfloat16)
    vb = v.astype(jnp.bfloat16)

    act_spec = pl.BlockSpec((bt, S, d_model), lambda b: (b, 0, 0))

    vmem_limit = int(min(max(2 * _vmem_bytes_per_step(bt, S, d_model, H, d_k, d_v,
                                                      attn_bytes),
                             32 * 1024 * 1024),
                         48 * 1024 * 1024))

    out, attn = pl.pallas_call(
        _imha_kernel,
        out_shape=(
            jax.ShapeDtypeStruct((B, S, d_model), jnp.float32),
            jax.ShapeDtypeStruct((H, B, S, S), attn_dtype),
        ),
        grid_spec=pltpu.PrefetchScalarGridSpec(
            num_scalar_prefetch=0,
            grid=(B // bt,),
            in_specs=[
                act_spec,                                               # q
                act_spec,                                               # k
                act_spec,                                               # v
                pl.BlockSpec((d_model, H * d_k), lambda b: (0, 0)),     # wq fused
                pl.BlockSpec((d_model, H * d_k), lambda b: (0, 0)),     # wk fused
                pl.BlockSpec((d_model, d_v), lambda b: (0, 0)),         # wv (shared)
                pl.BlockSpec((d_v, d_model), lambda b: (0, 0)),         # wo
            ],
            out_specs=(
                pl.BlockSpec((bt, S, d_model), lambda b: (b, 0, 0)),    # outputs
                pl.BlockSpec((H, bt, S, S), lambda b: (0, b, 0, 0)),    # attn
            ),
        ),
        compiler_params=pltpu.CompilerParams(
            dimension_semantics=("parallel",),
            vmem_limit_bytes=vmem_limit),
    )(qb, kb, vb, wq_all, wk_all, wvb, wob)

    if H == 1:
        attn = attn[0]   # module returns attns[0] (B, S, S) when n_head == 1
    return out, attn


def reference(q, k, v, wq, wk, wv, wo):
    """Pure-JAX f32 reference matching the PyTorch forward (eval / dropout off)."""
    H, _, d_k = wq.shape
    heads, attns = [], []
    for h in range(H):
        qs = q @ wq[h]
        ks = k @ wk[h]
        vs = v @ wv
        scores = (qs @ jnp.swapaxes(ks, -2, -1)) / jnp.sqrt(jnp.float32(d_k))
        attn = jax.nn.softmax(scores, axis=-1)
        heads.append(attn @ vs)
        attns.append(attn)
    if H > 1:
        outputs = jnp.mean(jnp.stack(heads, axis=0), axis=0)
        attn = jnp.stack(attns, axis=0)
    else:
        outputs = heads[0]
        attn = attns[0]
    return outputs @ wo, attn


if __name__ == "__main__":
    key = jax.random.PRNGKey(0)
    B, S, d_model = 2, 8, 32

    # TODO(synk): nn.Dropout layers are identity here (eval / dropout=0.0);
    # training-time dropout is not implemented in the kernel.
    for n_head in (1, 4):
        d_k = d_v = d_model // n_head
        keys = jax.random.split(jax.random.fold_in(key, n_head), 7)
        q = jax.random.normal(keys[0], (B, S, d_model), jnp.float32)
        k = jax.random.normal(keys[1], (B, S, d_model), jnp.float32)
        v = jax.random.normal(keys[2], (B, S, d_model), jnp.float32)
        wq = 0.1 * jax.random.normal(keys[3], (n_head, d_model, d_k), jnp.float32)
        wk = 0.1 * jax.random.normal(keys[4], (n_head, d_model, d_k), jnp.float32)
        wv = 0.1 * jax.random.normal(keys[5], (d_model, d_v), jnp.float32)
        # TODO(synk): the module's __init__ declares w_o = Linear(d_model, d_model), which
        # is only shape-consistent with its forward when n_head == 1 (d_v == d_model);
        # for n_head > 1 we use the evident TFT intent: w_o maps d_v -> d_model.
        wo = 0.1 * jax.random.normal(keys[6], (d_v, d_model), jnp.float32)

        out, attn = interpretable_mha(q, k, v, wq, wk, wv, wo)
        jax.block_until_ready((out, attn))

        out_r, attn_r = reference(q, k, v, wq, wk, wv, wo)
        assert out.shape == out_r.shape and attn.shape == attn_r.shape
        # bf16 MXU operands (f32 accumulation) -> loose tolerances; softmax
        # normalization itself is exact (rows of attn sum to ~1).
        assert jnp.allclose(attn, attn_r, atol=1e-2, rtol=1e-2)
        assert jnp.allclose(out, out_r, atol=2e-2, rtol=2e-2)

    print("KERNEL_OK")
</pallas_src>

<mosaic_0001>
module attributes {stable_mosaic.version = 11 : i64} {
  func.func @_imha_kernel(%arg0: i32, %arg1: memref<1x8x32xbf16, #tpu.memory_space<vmem>>, %arg2: memref<1x8x32xbf16, #tpu.memory_space<vmem>>, %arg3: memref<1x8x32xbf16, #tpu.memory_space<vmem>>, %arg4: memref<32x32xbf16, #tpu.memory_space<vmem>>, %arg5: memref<32x32xbf16, #tpu.memory_space<vmem>>, %arg6: memref<32x32xbf16, #tpu.memory_space<vmem>>, %arg7: memref<32x32xbf16, #tpu.memory_space<vmem>>, %arg8: memref<1x8x32xf32, #tpu.memory_space<vmem>>, %arg9: memref<1x1x8x8xf32, #tpu.memory_space<vmem>>) attributes {dimension_semantics = [#tpu.dimension_semantics<parallel>], iteration_bounds = array<i64: 2>, scalar_prefetch = 0 : i64, scratch_operands = 0 : i64, tpu.core_type = #tpu.core_type<tc>, window_params = [{transform_indices = @transform_0, window_bounds = array<i64: 1, 8, 32>}, {transform_indices = @transform_1, window_bounds = array<i64: 1, 8, 32>}, {transform_indices = @transform_2, window_bounds = array<i64: 1, 8, 32>}, {pipeline_mode = #tpu.pipeline_mode<synchronous>, transform_indices = @transform_3, window_bounds = array<i64: 32, 32>}, {pipeline_mode = #tpu.pipeline_mode<synchronous>, transform_indices = @transform_4, window_bounds = array<i64: 32, 32>}, {pipeline_mode = #tpu.pipeline_mode<synchronous>, transform_indices = @transform_5, window_bounds = array<i64: 32, 32>}, {pipeline_mode = #tpu.pipeline_mode<synchronous>, transform_indices = @transform_6, window_bounds = array<i64: 32, 32>}, {transform_indices = @transform_7, window_bounds = array<i64: 1, 8, 32>}, {transform_indices = @transform_8, window_bounds = array<i64: 1, 1, 8, 8>}]} {
    %cst = arith.constant 3.200000e+01 : f32
    %0 = math.sqrt %cst : f32
    %cst_0 = arith.constant 1.000000e+00 : f32
    %1 = arith.divf %cst_0, %0 : f32
    %cst_1 = arith.constant 1.000000e+00 : f32
    %cst_2 = arith.constant 1.000000e+00 : f32
    %2 = arith.divf %cst_1, %cst_2 : f32
    %c0 = arith.constant 0 : index
    %c0_3 = arith.constant 0 : index
    %c0_4 = arith.constant 0 : index
    %3 = vector.load %arg1[%c0, %c0_3, %c0_4] : memref<1x8x32xbf16, #tpu.memory_space<vmem>>, vector<1x8x32xbf16>
    %4 = vector.shape_cast %3 : vector<1x8x32xbf16> to vector<8x32xbf16>
    %c0_5 = arith.constant 0 : index
    %c0_6 = arith.constant 0 : index
    %c0_7 = arith.constant 0 : index
    %5 = vector.load %arg2[%c0_5, %c0_6, %c0_7] : memref<1x8x32xbf16, #tpu.memory_space<vmem>>, vector<1x8x32xbf16>
    %6 = vector.shape_cast %5 : vector<1x8x32xbf16> to vector<8x32xbf16>
    %c0_8 = arith.constant 0 : index
    %c0_9 = arith.constant 0 : index
    %c0_10 = arith.constant 0 : index
    %7 = vector.load %arg3[%c0_8, %c0_9, %c0_10] : memref<1x8x32xbf16, #tpu.memory_space<vmem>>, vector<1x8x32xbf16>
    %8 = vector.shape_cast %7 : vector<1x8x32xbf16> to vector<8x32xbf16>
    %c0_11 = arith.constant 0 : index
    %c0_12 = arith.constant 0 : index
    %9 = vector.load %arg4[%c0_11, %c0_12] : memref<32x32xbf16, #tpu.memory_space<vmem>>, vector<32x32xbf16>
    %cst_13 = arith.constant dense<0.000000e+00> : vector<8x32xf32>
    %10 = tpu.matmul %4, %9, %cst_13 {dimension_numbers = #tpu.dot_dimension_numbers<[1], [0], [0], [1], [0, 0, 1, 1], [], []>} : vector<8x32xbf16>, vector<32x32xbf16>, vector<8x32xf32> -> vector<8x32xf32>
    %c0_14 = arith.constant 0 : index
    %c0_15 = arith.constant 0 : index
    %11 = vector.load %arg5[%c0_14, %c0_15] : memref<32x32xbf16, #tpu.memory_space<vmem>>, vector<32x32xbf16>
    %cst_16 = arith.constant dense<0.000000e+00> : vector<8x32xf32>
    %12 = tpu.matmul %6, %11, %cst_16 {dimension_numbers = #tpu.dot_dimension_numbers<[1], [0], [0], [1], [0, 0, 1, 1], [], []>} : vector<8x32xbf16>, vector<32x32xbf16>, vector<8x32xf32> -> vector<8x32xf32>
    %c0_17 = arith.constant 0 : index
    %c0_18 = arith.constant 0 : index
    %13 = vector.load %arg6[%c0_17, %c0_18] : memref<32x32xbf16, #tpu.memory_space<vmem>>, vector<32x32xbf16>
    %cst_19 = arith.constant dense<0.000000e+00> : vector<8x32xf32>
    %14 = tpu.matmul %8, %13, %cst_19 {dimension_numbers = #tpu.dot_dimension_numbers<[1], [0], [0], [1], [0, 0, 1, 1], [], []>} : vector<8x32xbf16>, vector<32x32xbf16>, vector<8x32xf32> -> vector<8x32xf32>
    %15 = vector.broadcast %1 : f32 to vector<8x32xf32>
    %16 = arith.mulf %10, %15 : vector<8x32xf32>
    %17 = arith.truncf %16 : vector<8x32xf32> to vector<8x32xbf16>
    %18 = arith.truncf %12 : vector<8x32xf32> to vector<8x32xbf16>
    %19 = arith.truncf %14 : vector<8x32xf32> to vector<8x32xbf16>
    %cst_20 = arith.constant 0.000000e+00 : f32
    %20 = vector.broadcast %cst_20 : f32 to vector<8x8xf32>
    %cst_21 = arith.constant dense<0.000000e+00> : vector<8x8xf32>
    %21 = tpu.matmul %17, %18, %cst_21 {dimension_numbers = #tpu.dot_dimension_numbers<[1], [1], [0], [0], [0, 0, 1, 0], [], []>} : vector<8x32xbf16>, vector<8x32xbf16>, vector<8x8xf32> -> vector<8x8xf32>
    %cst_22 = arith.constant dense<0xFF800000> : vector<8xf32>
    %22 = vector.multi_reduction <maximumf>, %21, %cst_22 [1] : vector<8x8xf32> to vector<8xf32>
    %23 = vector.shape_cast %22 : vector<8xf32> to vector<8x1xf32>
    %24 = vector.broadcast %23 : vector<8x1xf32> to vector<8x8xf32>
    %25 = arith.subf %21, %24 : vector<8x8xf32>
    %26 = math.exp %25 : vector<8x8xf32>
    %cst_23 = arith.constant dense<0.000000e+00> : vector<8xf32>
    %27 = vector.multi_reduction <add>, %26, %cst_23 [1] : vector<8x8xf32> to vector<8xf32>
    %28 = vector.shape_cast %27 : vector<8xf32> to vector<8x1xf32>
    %cst_24 = arith.constant 1.000000e+00 : f32
    %29 = vector.broadcast %cst_24 : f32 to vector<8x1xf32>
    %30 = arith.divf %29, %28 : vector<8x1xf32>
    %31 = vector.broadcast %30 : vector<8x1xf32> to vector<8x8xf32>
    %32 = arith.mulf %26, %31 : vector<8x8xf32>
    %c0_25 = arith.constant 0 : index
    %c0_26 = arith.constant 0 : index
    %c0_27 = arith.constant 0 : index
    %c0_28 = arith.constant 0 : index
    %33 = vector.load %arg9[%c0_25, %c0_26, %c0_27, %c0_28] : memref<1x1x8x8xf32, #tpu.memory_space<vmem>>, vector<1x1x8x8xf32>
    %34 = vector.shape_cast %33 : vector<1x1x8x8xf32> to vector<8x8xf32>
    %35 = vector.shape_cast %32 : vector<8x8xf32> to vector<1x1x8x8xf32>
    tpu.vector_store %arg9[%c0_25, %c0_26, %c0_27, %c0_28], %35 {strides = array<i32>} : memref<1x1x8x8xf32, #tpu.memory_space<vmem>>, vector<1x1x8x8xf32>,
    %36 = arith.addf %20, %32 : vector<8x8xf32>
    %37 = vector.broadcast %2 : f32 to vector<8x8xf32>
    %38 = arith.mulf %36, %37 : vector<8x8xf32>
    %39 = vector.shape_cast %38 : vector<8x8xf32> to vector<1x8x8xf32>
    %40 = arith.truncf %39 : vector<1x8x8xf32> to vector<1x8x8xbf16>
    %41 = vector.shape_cast %19 : vector<8x32xbf16> to vector<1x8x32xbf16>
    "tpu.trace_start"() <{level = 10 : i32, message = "bqk,bkd->bqd"}> : () -> ()
    %cst_29 = arith.constant dense<0.000000e+00> : vector<1x8x32xf32>
    %42 = tpu.matmul %40, %41, %cst_29 {dimension_numbers = #tpu.dot_dimension_numbers<[2], [1], [1], [2], [0, 0, 0, 1, 1, 2], [0], [0]>} : vector<1x8x8xbf16>, vector<1x8x32xbf16>, vector<1x8x32xf32> -> vector<1x8x32xf32>
    "tpu.trace_stop"() : () -> ()
    %43 = vector.shape_cast %42 : vector<1x8x32xf32> to vector<8x32xf32>
    %44 = arith.truncf %43 : vector<8x32xf32> to vector<8x32xbf16>
    %c0_30 = arith.constant 0 : index
    %c0_31 = arith.constant 0 : index
    %45 = vector.load %arg7[%c0_30, %c0_31] : memref<32x32xbf16, #tpu.memory_space<vmem>>, vector<32x32xbf16>
    %cst_32 = arith.constant dense<0.000000e+00> : vector<8x32xf32>
    %46 = tpu.matmul %44, %45, %cst_32 {dimension_numbers = #tpu.dot_dimension_numbers<[1], [0], [0], [1], [0, 0, 1, 1], [], []>} : vector<8x32xbf16>, vector<32x32xbf16>, vector<8x32xf32> -> vector<8x32xf32>
    %47 = vector.shape_cast %46 : vector<8x32xf32> to vector<1x8x32xf32>
    %c0_33 = arith.constant 0 : index
    %c0_34 = arith.constant 0 : index
    %c0_35 = arith.constant 0 : index
    %48 = vector.load %arg8[%c0_33, %c0_34, %c0_35] : memref<1x8x32xf32, #tpu.memory_space<vmem>>, vector<1x8x32xf32>
    tpu.vector_store %arg8[%c0_33, %c0_34, %c0_35], %47 {strides = array<i32>} : memref<1x8x32xf32, #tpu.memory_space<vmem>>, vector<1x8x32xf32>,
    return
  }
  func.func @transform_0(%arg0: i32) -> (i32, i32, i32) {
    %c0_i32 = arith.constant 0 : i32
    %c0_i32_0 = arith.constant 0 : i32
    %c0_i32_1 = arith.constant 0 : i32
    return %arg0, %c0_i32, %c0_i32_0 : i32, i32, i32
  }
  func.func @transform_1(%arg0: i32) -> (i32, i32, i32) {
    %c0_i32 = arith.constant 0 : i32
    %c0_i32_0 = arith.constant 0 : i32
    %c0_i32_1 = arith.constant 0 : i32
    return %arg0, %c0_i32, %c0_i32_0 : i32, i32, i32
  }
  func.func @transform_2(%arg0: i32) -> (i32, i32, i32) {
    %c0_i32 = arith.constant 0 : i32
    %c0_i32_0 = arith.constant 0 : i32
    %c0_i32_1 = arith.constant 0 : i32
    return %arg0, %c0_i32, %c0_i32_0 : i32, i32, i32
  }
  func.func @transform_3(%arg0: i32) -> (i32, i32) {
    %c0_i32 = arith.constant 0 : i32
    %c0_i32_0 = arith.constant 0 : i32
    %c0_i32_1 = arith.constant 0 : i32
    return %c0_i32, %c0_i32_0 : i32, i32
  }
  func.func @transform_4(%arg0: i32) -> (i32, i32) {
    %c0_i32 = arith.constant 0 : i32
    %c0_i32_0 = arith.constant 0 : i32
    %c0_i32_1 = arith.constant 0 : i32
    return %c0_i32, %c0_i32_0 : i32, i32
  }
  func.func @transform_5(%arg0: i32) -> (i32, i32) {
    %c0_i32 = arith.constant 0 : i32
    %c0_i32_0 = arith.constant 0 : i32
    %c0_i32_1 = arith.constant 0 : i32
    return %c0_i32, %c0_i32_0 : i32, i32
  }
  func.func @transform_6(%arg0: i32) -> (i32, i32) {
    %c0_i32 = arith.constant 0 : i32
    %c0_i32_0 = arith.constant 0 : i32
    %c0_i32_1 = arith.constant 0 : i32
    return %c0_i32, %c0_i32_0 : i32, i32
  }
  func.func @transform_7(%arg0: i32) -> (i32, i32, i32) {
    %c0_i32 = arith.constant 0 : i32
    %c0_i32_0 = arith.constant 0 : i32
    %c0_i32_1 = arith.constant 0 : i32
    return %arg0, %c0_i32, %c0_i32_0 : i32, i32, i32
  }
  func.func @transform_8(%arg0: i32) -> (i32, i32, i32, i32) {
    %c0_i32 = arith.constant 0 : i32
    %c0_i32_0 = arith.constant 0 : i32
    %c0_i32_1 = arith.constant 0 : i32
    %c0_i32_2 = arith.constant 0 : i32
    return %c0_i32, %arg0, %c0_i32_0, %c0_i32_1 : i32, i32, i32, i32
  }
}

</mosaic_0001>

<bundles_post_ra>
// kernel: tpu_custom_call.1
= control target key start
LH: loop header
LB: loop body
LE: loop exit
PB: predicated region body
PF: predicated region fallthrough
CT: control target
= control target key end

     0   :  { %s1722_s0 = inlined_call_operand.hbm [shape: bf16[2,8,32], index: 0, kind: input, shape index: {}]   ;;  %s1723_s1 = inlined_call_operand.hbm [shape: bf16[2,8,32], index: 1, kind: input, shape index: {}]   ;;  %s1724_s2 = inlined_call_operand.hbm [shape: bf16[2,8,32], index: 2, kind: input, shape index: {}]   ;;  %s1725_s3 = inlined_call_operand.hbm [shape: bf16[32,32], index: 3, kind: input, shape index: {}]   ;;  %s1726_s4 = inlined_call_operand.hbm [shape: bf16[32,32], index: 4, kind: input, shape index: {}]   ;;  %s1727_s5 = inlined_call_operand.hbm [shape: bf16[32,32], index: 5, kind: input, shape index: {}]   ;;  %s1728_s6 = inlined_call_operand.hbm [shape: bf16[32,32], index: 6, kind: input, shape index: {}]   ;;  %s1729_s7 = inlined_call_operand.hbm [shape: f32[2,8,32], index: 7, kind: output, shape index: {0}]   ;;  %s1730_s8 = inlined_call_operand.hbm [shape: f32[1,2,8,8], index: 8, kind: output, shape index: {1}]  }
   0x1   :  { %1740 = sst [smem:[#allocation26_spill]] %s1723_s1 }
   0x2   :  { %1741 = sst [smem:[#allocation27_spill]] %s1725_s3 }
   0x3   :  { %1742 = sst [smem:[#allocation28_spill]] %s1726_s4 }
   0x4   :  { %1743 = sst [smem:[#allocation29_spill]] %s1727_s5 }
   0x5   :  { %1744 = sst [smem:[#allocation30_spill]] %s1728_s6 }
   0x6   :  { %14 = vsyncpa [#allocation3], 0 }
   0x7   :  { %16 = vsyncpa [#allocation3 + $0x1], 0 }
   0x8   :  { %17 = vsyncpa [#allocation6], 0 }
   0x9   :  { %19 = vsyncpa [#allocation6 + $0x1], 0 }
   0xa   :  { %20 = vsyncpa [#allocation9], 0 }
   0xb   :  { %21 = vsyncpa [#allocation12], 0 }
   0xc   :  { %22 = vsyncpa [#allocation4], 0 }
   0xd   :  { %24 = vsyncpa [#allocation4 + $0x1], 0 }
   0xe   :  { %25 = vsyncpa [#allocation16], 0 }
   0xf   :  { %27 = vsyncpa [#allocation16 + $0x1], 0  ;;  %s1457_s27 = smov 0   ;;  %s1459_s28 = smov 0  }
  0x10   :  { %s1461_s29 = smov 0   ;;  %s1463_s30 = smov 0  }
  0x11 LB: > { %1745 = sst [smem:[#allocation23_spill]] %s1404_s30  ;;  %s1481_s12 = sadd.s32 4294967295, %s1404_s30   ;;  %s1404_s30 = sphi %s1463_s30, %s1768_s30   ;;  %s1400_s29 = sphi %s1461_s29, %s1772_s29   ;;  %s1396_s28 = sphi %s1459_s28, %s1771_s28   ;;  %s1392_s27 = sphi %s1457_s27, %s1770_s27  }
  0x12   : > { %s1746_s3 = sld [smem:[#allocation27_spill]]  ;;  %p902_p0 = scmp.ge.s32.totalorder %s1404_s30, 1 }
  0x13   : > { %p1738_p1 = scmp.eq.s32.totalorder %s1481_s12, 0  ;;  %p252_p2 = scmp.lt.s32.totalorder %s1404_s30, 3 }
  0x14   : > { %s1406_s14 = smov [#allocation8]   ;;  %s1748_s5 = sld [smem:[#allocation29_spill]] }
  0x15   : > { %p1486_p3 = pnand %p902_p0, %p252_p2  ;;  %s265_s15 = sshll.u32 %s1406_s14, 4  ;;  %s266_s15 = int_to_ptr.vmem [resolvable:$true] %s265_s15 }
  0x16   : > { %s1407_s20 = smov [#allocation11]   ;;  %s1731_s22 = smov 64  }
  0x17   : > { %p1002_p4 = pneg %p1486_p3  ;;  %s293_s21 = sshll.u32 %s1407_s20, 4  ;;  %s294_s21 = int_to_ptr.vmem [resolvable:$true] %s293_s21 }
  0x18   : > { %s263_s11 = sshll.u32 %s1746_s3, 4  ;;  %s1733_s23 = smov 4   ;;  %s264_s11 = int_to_ptr.hbm [resolvable:$true] %s263_s11 }
  0x19   : > { %p1498_p6 = pnand %p1002_p4, %p1738_p1  ;;  %s901_s24 = sadd.s32 4294967294, %s1404_s30  }
  0x1a   : > { %s291_s18 = sshll.u32 %s1748_s5, 4  ;;  %s1514_s25 = sadd.s32 1, %s1404_s30   ;;  %s292_s18 = int_to_ptr.hbm [resolvable:$true] %s291_s18 }
  0x1b   : > { %1005 = dma.hbm_to_vmem [thread:$0]  (!%p1498_p6), %s264_s11, 256, %s266_s15, [#allocation9], %s1731_s22, %s1731_s22, %s1733_s23  }
  0x1c   : > { %1011 = dma.hbm_to_vmem [thread:$0]  (!%p1498_p6), %s292_s18, 256, %s294_s21, [#allocation12], %s1731_s22, %s1731_s22, %s1733_s23  }
  0x1d   : > { %1750 = sst [smem:[#allocation24_spill]] %s1514_s25  ;;  %s37_s26 = ssub.s32 %s1404_s30, %s1514_s25 }
  0x1e   : > { %s40_s9 = sadd.s32 1, %s1400_s29  ;;  %p38_p7 = scmp.eq.s32.totalorder %s37_s26, 0 }
  0x1f   : > { %p47_p8 = scmp.ne.s32.totalorder %s1400_s29, %s1396_s28  ;;  %p48_p9 = scmp.eq.s32.totalorder %s1404_s30, 0 }
  0x20   : > { %p53_p10 = scmp.ne.s32.totalorder %s1396_s28, %s1392_s27  ;;  %p213_p13 = scmp.eq.s32.totalorder %s1481_s12, 1 }
  0x21   : > { %s1525_s10 = scalar_select %p38_p7, %s1400_s29, %s40_s9  }
  0x22   : > { %p49_p11 = por %p48_p9, %p47_p8  ;;  %p1529_p12 = por %p1738_p1, %p53_p10 }
  0x23   : > { %1751 = sst [smem:[#allocation25_spill]] %s1525_s10  ;;  %p219_p0 = scmp.eq.s32.totalorder %s901_s24, 1 }
  0x24   : > { %p1036_p2 = scmp.lt.s32.totalorder %s1404_s30, 2  ;;  %s1735_s14 = sand.u32 1, %s1400_s29  }
  0x25   : > { %p1536_p4 = por %p213_p13, %p47_p8  ;;  %p1540_p5 = por %p219_p0, %p53_p10 }
  0x26   : > { %s1546_s17 = sshll.u32 %s1735_s14, 2  ;;  %s1549_s18 = sshll.u32 %s1404_s30, 2 }
  0x27   : > { %p1551_p7 = pnand %p1036_p2, %p49_p11  ;;  %s340_s21 = sand.u32 1, %s1404_s30  }
  0x28   : > { %s1756_s1 = sld [smem:[#allocation26_spill]]  ;;  %s344_s23 = scalar_lea.vmem [#allocation5], %s1546_s17 }
  0x29   : > { %s352_s3 = sshll.u32 %s344_s23, 4  ;;  %s1561_s14 = scalar_lea.sflag [#allocation6], %s340_s21  ;;  %s353_s3 = int_to_ptr.vmem [resolvable:$true] %s352_s3 }
  0x2a   : > { %p1148_p9 = pneg %p1551_p7 }
  0x2e   : > { %s348_s9 = scalar_lea.hbm %s1756_s1, %s1549_s18  ;;  %s1151_s26 = scalar_lea.hbm %s1756_s1, 8 }
  0x2f   : > { %s350_s22 = sshll.u32 %s348_s9, 4  ;;  %s351_s22 = int_to_ptr.hbm [resolvable:$true] %s350_s22 }
  0x30   : > { %s1144_s5 = sshra.s32 %s351_s22, 4  ;;  %s1145_s5 = int_to_ptr.hbm [resolvable:$true] %s1144_s5 }
  0x31   : > { %s1146_s10 = scalar_lea.hbm %s1145_s5, 4  ;;  %p1152_p13 = scmp.lt.s32.totalorder %s1145_s5, %s1756_s1 }
  0x32   : > { %p1147_p8 = scmp.ne.s32.totalorder %s1145_s5, %s1146_s10  ;;  %p1153_p0 = scmp.lt.s32.totalorder %s1151_s26, %s1146_s10 }
  0x34   : > { %p1149_p10 = pnand %p1148_p9, %p1147_p8  ;;  %p1154_p2 = por %p1153_p0, %p1152_p13 }
  0x36   : > { %p1150_p11 = pneg %p1149_p10 }
  0x38   : > { %p1155_p1 = pnand %p1154_p2, %p1150_p11 }
  0x3a   : > { %1158 = shalt.err (!%p1155_p1)
}
  0x3b   : > { %1021 = dma.hbm_to_vmem [thread:$0]  (!%p1551_p7), %s351_s22, 64, %s353_s3, %s1561_s14  }
  0x3c   : > { %s1757_s4 = sld [smem:[#allocation28_spill]]  ;;  %s1410_s24 = smov [#allocation10]  }
  0x3d   : > { %s279_s5 = sshll.u32 %s1410_s24, 4  ;;  %s1758_s6 = sld [smem:[#allocation30_spill]]  ;;  %s280_s5 = int_to_ptr.vmem [resolvable:$true] %s279_s5 }
  0x3e   : > { %s1759_s23 = smov 4   ;;  %s1760_s1 = smov 64  }
  0x3f   : > { %s1411_s3 = smov [#allocation13]   ;;  %s329_s24 = scalar_lea.hbm %s1722_s0, %s1549_s18 }
  0x40   : > { %s307_s22 = sshll.u32 %s1411_s3, 4  ;;  %s325_s10 = scalar_lea.vmem [#allocation2], %s1546_s17  ;;  %s308_s22 = int_to_ptr.vmem [resolvable:$true] %s307_s22 }
  0x41   : > { %s333_s26 = sshll.u32 %s325_s10, 4  ;;  %s334_s26 = int_to_ptr.vmem [resolvable:$true] %s333_s26 }
  0x42   : > { %s277_s25 = sshll.u32 %s1757_s4, 4  ;;  %s331_s4 = sshll.u32 %s329_s24, 4  ;;  %s278_s25 = int_to_ptr.hbm [resolvable:$true] %s277_s25  ;;  %s332_s4 = int_to_ptr.hbm [resolvable:$true] %s331_s4 }
  0x43   : > { %s305_s9 = sshll.u32 %s1758_s6, 4  ;;  %s1234_s6 = sshra.s32 %s332_s4, 4  ;;  %s306_s9 = int_to_ptr.hbm [resolvable:$true] %s305_s9  ;;  %s1235_s6 = int_to_ptr.hbm [resolvable:$true] %s1234_s6 }
  0x44   : > { %1008 = dma.hbm_to_vmem [thread:$0]  (!%p1498_p6), %s278_s25, 256, %s280_s5, [#allocation9], %s1760_s1, %s1760_s1, %s1759_s23  }
  0x45   : > { %1014 = dma.hbm_to_vmem [thread:$0]  (!%p1498_p6), %s306_s9, 256, %s308_s22, [#allocation12], %s1760_s1, %s1760_s1, %s1759_s23  }
  0x46   : > { %s1761_s25 = sand.u32 1, %s1400_s29   ;;  %s1236_s3 = scalar_lea.hbm %s1235_s6, 4 }
  0x47   : > { %s322_s5 = scalar_lea.sflag [#allocation3], %s1761_s25  ;;  %p1237_p1 = scmp.ne.s32.totalorder %s1235_s6, %s1236_s3 }
  0x48   : > { %s1241_s9 = scalar_lea.hbm %s1722_s0, 8  ;;  %p1242_p6 = scmp.lt.s32.totalorder %s1235_s6, %s1722_s0 }
  0x49   : > { %p1239_p8 = pnand %p1237_p1, %p1148_p9  ;;  %p1243_p11 = scmp.lt.s32.totalorder %s1241_s9, %s1236_s3 }
  0x4b   : > { %p1240_p10 = pneg %p1239_p8  ;;  %p1244_p13 = por %p1243_p11, %p1242_p6 }
  0x4d   : > { %p1245_p0 = pnand %p1244_p13, %p1240_p10 }
  0x4f   : > { %1248 = shalt.err (!%p1245_p0)
}
  0x50   : > { %1018 = dma.hbm_to_vmem [thread:$0]  (!%p1551_p7), %s332_s4, 64, %s334_s26, %s322_s5  }
  0x51   : > { %s367_s24 = scalar_lea.hbm %s1724_s2, %s1549_s18  ;;  %s363_s10 = scalar_lea.vmem [#allocation7], %s1546_s17 }
  0x52   : > { %s371_s25 = sshll.u32 %s363_s10, 4  ;;  %s369_s1 = sshll.u32 %s367_s24, 4  ;;  %s372_s25 = int_to_ptr.vmem [resolvable:$true] %s371_s25  ;;  %s370_s1 = int_to_ptr.hbm [resolvable:$true] %s369_s1 }
  0x53   : > { %s1264_s6 = sshra.s32 %s370_s1, 4  ;;  %s1271_s4 = scalar_lea.hbm %s1724_s2, 8  ;;  %s1265_s6 = int_to_ptr.hbm [resolvable:$true] %s1264_s6 }
  0x54   : > { %s1266_s3 = scalar_lea.hbm %s1265_s6, 4  ;;  %p1272_p10 = scmp.lt.s32.totalorder %s1265_s6, %s1724_s2 }
  0x55   : > { %p1267_p2 = scmp.ne.s32.totalorder %s1265_s6, %s1266_s3  ;;  %p1273_p6 = scmp.lt.s32.totalorder %s1271_s4, %s1266_s3 }
  0x57   : > { %p1269_p1 = pnand %p1267_p2, %p1148_p9  ;;  %p1274_p11 = por %p1273_p6, %p1272_p10 }
  0x59   : > { %p1270_p8 = pneg %p1269_p1 }
  0x5b   : > { %p1275_p13 = pnand %p1274_p11, %p1270_p8 }
  0x5d   : > { %1278 = shalt.err (!%p1275_p13)
}
  0x5e   : > { %1024 = dma.hbm_to_vmem [thread:$0]  (!%p1551_p7), %s370_s1, 64, %s372_s25, %s1561_s14  }
  0x5f   : > { %380 = sbr.rel (%p1486_p3) target bundleno = 914 (0x392), region = 48  ;;  %s1631_s17 = sand.u32 (!%p1486_p3), 1, %s1396_s28  }
  0x60   : > { %s1634_s18 = sshll.u32 (!%p1486_p3), %s1631_s17, 2  ;;  %s383_s23 = scalar_lea.sflag (!%p1486_p3), [#allocation3], %s1631_s17 }
  0x61   : > { %s386_s22 = scalar_lea.vmem (!%p1486_p3), [#allocation2], %s1634_s18 }
  0x64   : > { %1367 = dma.done.wait (%p1529_p12), %s383_s23, 64  }
  0x65   : > { %1369 = vsyncadd (%p1529_p12), %s383_s23, 4294967232  ;;  %s392_s13 = sand.u32 1, %s1481_s12   ;;  %s396_s20 = scalar_lea.vmem [#allocation5], %s1634_s18 }
  0x66   : > { %s393_s14 = scalar_lea.sflag [#allocation6], %s392_s13 }
  0x67   : > { %1371 = dma.done.wait (%p1529_p12), %s393_s14, 128  }
  0x68   : > { %1373 = vsyncadd (%p1529_p12), %s393_s14, 4294967168  ;;  %s406_s30 = scalar_lea.vmem [#allocation7], %s1634_s18  ;;  %p1762_p3 = scmp.eq.s32.totalorder %s1481_s12, 0 }
  0x6a   : > { %1375 = dma.done.wait (%p1762_p3), [#allocation9], 512   ;;  %p1763_p7 = pmov %p1762_p3 }
  0x6b   : > { %p1764_p9 = pmov %p1762_p3 }
  0x6c   : > { %1377 = vsyncadd (%p1763_p7), [#allocation9], 4294966784 }
  0x6d   : > { %1379 = dma.done.wait (%p1764_p9), [#allocation12], 512   ;;  %p1765_p0 = pmov %p1762_p3 }
  0x6e   : > { %v969_v0 = vld [vmem:[#allocation8 + $0x8] sm:$0xff]  ;;  %v971_v1 = vld [vmem:[#allocation10 + $0x8] sm:$0xff]  ;;  %v968_v2 = vld [vmem:[#allocation8] sm:$0xff]  ;;  %vm495_vm0 = vcmask 261120   ;;  %vm599_vm1 = vcmask 64512   ;;  %vm631_vm2 = vcmask 1043456  }
  0x6f   : > { %1381 = vsyncadd (%p1765_p0), [#allocation12], 4294966784  ;;  %505 = vmatpush.bf16.msra.mxu0 %v969_v0  ;;  %537 = vmatpush.bf16.msra.mxu1 %v971_v1  ;;  %v970_v3 = vld [vmem:[#allocation10] sm:$0xff]  ;;  %v476_v4 = vld [vmem:[%s386_s22] sm:$0xf]  ;;  %s922_s11 = sshll.u32 %s1631_s17, 3 }
  0x70   : > { %v477_v5 = vld [vmem:[%s396_s20] sm:$0xf]  ;;  %v973_v14 = vld [vmem:[#allocation11 + $0x8] sm:$0xff]  ;;  %v972_v15 = vld [vmem:[#allocation11] sm:$0xff]  ;;  %s474_s21 = scalar_lea.vmem [#allocation15], %s922_s11  ;;  %s964_s24 = sshll.u32 %s1481_s12, 3 }
  0x71   : > { %569 = vmatpush.bf16.msra.mxu2 %v973_v14  ;;  %v478_v16 = vld [vmem:[%s406_s30] sm:$0xf]  ;;  %v974_v30 = vld [vmem:[#allocation13] sm:$0xff]  ;;  %s712_s1 = scalar_lea.hbm %s1730_s8, %s964_s24  ;;  %s714_s6 = sshll.u32 %s474_s21, 4  ;;  %s715_s6 = int_to_ptr.vmem [resolvable:$true] %s714_s6 }
  0x72   : > { %v975_v29 = vld [vmem:[#allocation13 + $0x8] sm:$0xff]  ;;  %s716_s3 = sshll.u32 %s712_s1, 4  ;;  %s688_s19 = scalar_lea.sflag [#allocation16], %s1631_s17  ;;  %s717_s3 = int_to_ptr.hbm [resolvable:$true] %s716_s3 }
  0x73   : > { %506 = vmatpush.bf16.msra.mxu0 %v968_v2  ;;  %538 = vmatpush.bf16.msra.mxu1 %v970_v3  ;;  %s1308_s9 = sshra.s32 %s717_s3, 4  ;;  %s1314_s12 = scalar_lea.hbm %s1730_s8, 16  ;;  %s1309_s9 = int_to_ptr.hbm [resolvable:$true] %s1308_s9 }
  0x74   : > { %s1310_s4 = scalar_lea.hbm %s1309_s9, 8  ;;  %p1315_p8 = scmp.lt.s32.totalorder %s1309_s9, %s1730_s8 }
  0x75   : > { %570 = vmatpush.bf16.msra.mxu2 %v972_v15  ;;  %p1311_p12 = scmp.ne.s32.totalorder %s1309_s9, %s1310_s4  ;;  %p1316_p10 = scmp.lt.s32.totalorder %s1314_s12, %s1310_s4 }
  0x76   : > { %932 = vmatmul.msk.bf16.vlgmr.msra.gmra.mxu0 %vm495_vm0, %v476_v4  ;;  %941 = vmatmul.msk.bf16.vlgmr.msra.gmra.mxu1 %vm495_vm0, %v477_v5 }
  0x77   : > { %674 = vmatpush.bf16.msrb.mxu1 %v975_v29  ;;  %p1312_p2 = pnand %p1311_p12, %p1536_p4  ;;  %p1317_p6 = por %p1316_p10, %p1315_p8 }
  0x78   : > { %950 = vmatmul.msk.bf16.vlgmr.msra.gmra.mxu2 %vm495_vm0, %v478_v16 }
  0x79   : > { %p1313_p1 = pneg %p1312_p2 }
  0x7b   : > { %675 = vmatpush.bf16.msrb.mxu1 %v974_v30  ;;  %p1318_p11 = pnand %p1317_p6, %p1313_p1 }
  0xf3   : > { %v508_v6 = vpop.f32.mrf.mxu0  ;;  %v540_v7 = vpop.f32.mrf.mxu1 }
  0xf4   : > { %v578_v8 = vpack.c.bf16 %v540_v7, %v540_v7  ;;  %v576_v9 = vmul.f32 0.17677669, %v508_v6 }
  0xf6   : > { %v584_v10 = vsel %vm495_vm0, %v578_v8, 0  ;;  %v577_v11 = vpack.c.bf16 %v576_v9, %v576_v9 }
  0xf7   : > { %593 = vmatpush.bf16.xpose.msra.mxu3 %v584_v10 }
  0xfb   : > { %v510_v12 = vpop.f32.mrf.mxu0  ;;  %v542_v13 = vpop.f32.mrf.mxu1 }
  0xfc   : > { %v572_v20 = vpop.f32.mrf.mxu2 }
  0xfd   : > { %v579_v27 = vpack.c.bf16 %v572_v20, %v572_v20 }
  0xfe   : > { %951 = vmatmul.msk.bf16.vlgmr.msra.gmra.mxu3 %vm495_vm0, %v577_v11 }
  0xff   : > { %v633_v28 = vsel %vm631_vm2, %v579_v27, 0 }
 0x100   : > { %642 = vmatpush.bf16.msrb.mxu0 %v633_v28 }
 0x104   : > { %v574_v24 = vpop.f32.mrf.mxu2 }
 0x181   : > { %v595_v17 = vpop.f32.mrf.mxu3 }
 0x182   : > { %v600_v18 = vsel %vm599_vm1, %v595_v17, -inf }
 0x183   : > { %601 = vmax.xlane.f32.xlu0 %v600_v18 }
 0x189   : > { %v597_v19 = vpop.f32.mrf.mxu3 }
 0x1f6   : > { %v602_v21 = vpop.xlane.xlu0 %601 }
 0x1f7   : > { %v603_v22 = vsub.f32 %v595_v17, %v602_v21 }
 0x1f9   : > { %v604_v23 = vmul.f32 1.442695, %v603_v22 }
 0x1fb   : > { %1080 = vpow2.f32 %v604_v23 }
 0x201   : > { %v1081_v25 = vpop.eup %1080 }
 0x202   : > { %v606_v26 = vsel %vm599_vm1, %v1081_v25, 0.0 }
 0x203   : > { %607 = vadd.xlane.f32.xlu0 %v606_v26 }
 0x276   : > { %v608_v31 = vpop.xlane.xlu0 %607 }
 0x277   : > { %1082 = vrcp.f32 %v608_v31  ;;  %v620_v35 = vand.u32 2147483648, %v608_v31  ;;  %v618_v37 = vand.u32 2147483647, %v608_v31  ;;  %vm614_vm4 = vweird.f32 %v608_v31 }
 0x279   : > { %v621_v39 = vor.u32 1.1754944e-38, %v620_v35  ;;  %vm619_vm6 = vcmp.eq.f32.partialorder %v618_v37, 8.507059e+37 }
 0x27d   : > { %v1083_v32 = vpop.eup %1082 }
 0x27e   : > { %v610_v33 = vmul.f32 %v1083_v32, %v608_v31  ;;  %vm615_vm3 = vweird.f32 %v1083_v32 }
 0x27f   : > { %vm616_vm5 = vmor %vm614_vm4, %vm615_vm3 }
 0x280   : > { %v611_v34 = vsub.f32 1.0, %v610_v33 }
 0x282   : > { %v612_v36 = vmul.f32 %v1083_v32, %v611_v34 }
 0x284   : > { %v613_v38 = vadd.f32 %v1083_v32, %v612_v36 }
 0x286   : > { %v617_v40 = vsel %vm616_vm5, %v1083_v32, %v613_v38 }
 0x287   : > { %v622_v41 = vsel %vm619_vm6, %v621_v39, %v617_v40 }
 0x288   : > { %v624_v42 = vmul.f32 %v1081_v25, %v622_v41 }
 0x28a   : > { %v627_v43 = vpack.c.bf16 %v624_v42, %v624_v42  ;;  %625 = vst.msk [vmem:[%s474_s21] sm:$0xff] %vm599_vm1, %v624_v42 }
 0x28c   : > { %952 = vmatmul.msk.bf16.vlgmr.msrb.gmra.mxu0 %vm599_vm1, %v627_v43 }
 0x309   : > { %v644_v44 = vpop.f32.mrf.mxu0 }
 0x30a   : > { %v648_v45 = vpack.c.bf16 %v644_v44, %v644_v44 }
 0x30c   : > { %961 = vmatmul.msk.bf16.vlgmr.msrb.gmra.mxu1 %vm495_vm0, %v648_v45 }
 0x311   : > { %v646_v46 = vpop.f32.mrf.mxu0 }
 0x312   : > { %1321 = shalt.err (!%p1318_p11)
}
 0x313   : > { %999 = dma.vmem_to_hbm [thread:$0]  (%p1536_p4), %s715_s6, 128, %s717_s3, %s688_s19  }
 0x314   : > { %s698_s14 = scalar_lea.hbm %s1729_s7, %s964_s24  ;;  %s467_s20 = scalar_lea.vmem [#allocation14], %s922_s11 }
 0x315   : > { %s700_s30 = sshll.u32 %s467_s20, 4  ;;  %s702_s21 = sshll.u32 %s698_s14, 4  ;;  %s701_s30 = int_to_ptr.vmem [resolvable:$true] %s700_s30  ;;  %s703_s21 = int_to_ptr.hbm [resolvable:$true] %s702_s21 }
 0x316   : > { %s683_s10 = scalar_lea.sflag [#allocation4], %s1631_s17  ;;  %s1336_s25 = sshra.s32 %s703_s21, 4  ;;  %s1337_s25 = int_to_ptr.hbm [resolvable:$true] %s1336_s25 }
 0x317   : > { %s1338_s1 = scalar_lea.hbm %s1337_s25, 8  ;;  %s1342_s24 = scalar_lea.hbm %s1729_s7, 16 }
 0x318   : > { %p1339_p13 = scmp.ne.s32.totalorder %s1337_s25, %s1338_s1  ;;  %p1343_p9 = scmp.lt.s32.totalorder %s1337_s25, %s1729_s7 }
 0x319   : > { %p1344_p0 = scmp.lt.s32.totalorder %s1342_s24, %s1338_s1 }
 0x31a   : > { %p1340_p3 = pnand %p1339_p13, %p1536_p4 }
 0x31b   : > { %p1345_p12 = por %p1344_p0, %p1343_p9 }
 0x31c   : > { %p1341_p7 = pneg %p1340_p3 }
 0x31e   : > { %p1346_p2 = pnand %p1345_p12, %p1341_p7 }
 0x389   : > { %v677_v47 = vpop.f32.mrf.mxu1 }
 0x38a   : > { %681 = vst.msk [vmem:[%s467_s20] sm:$0xff] %vm495_vm0, %v677_v47 }
 0x38b   : > { %1349 = shalt.err (!%p1346_p2)
}
 0x38c   : > { %998 = dma.vmem_to_hbm [thread:$0]  (%p1536_p4), %s701_s30, 128, %s703_s21, %s683_s10  }
 0x391   : > { %v679_v48 = vpop.f32.mrf.mxu1 }
 0x392 PF: > { %s1766_s17 = sld [smem:[#allocation23_spill]]  ;;  %s728_s9 = sand.u32 1, %s1392_s27  }
 0x393   : > { %s729_s4 = scalar_lea.sflag [#allocation4], %s728_s9 }
 0x398   : > { %p1767_p1 = scmp.ge.s32.totalorder %s1766_s17, 2 }
 0x39a   : > { %p1026_p8 = pnand %p1767_p1, %p1540_p5 }
 0x39c   : > { %p1027_p10 = pneg %p1026_p8 }
 0x39e   : > { %1383 = dma.done.wait (%p1027_p10), %s729_s4, 128  }
 0x39f   : > { %1385 = vsyncadd (%p1027_p10), %s729_s4, 4294967168  ;;  %s739_s26 = scalar_lea.sflag [#allocation16], %s728_s9 }
 0x3a0   : > { %1387 = dma.done.wait (%p1027_p10), %s739_s26, 128  }
 0x3a1   : > { %1389 = vsyncadd (%p1027_p10), %s739_s26, 4294967168  ;;  %s1768_s30 = sld [smem:[#allocation24_spill]]  ;;  %s1770_s27 = smov %s1396_s28 }
 0x3a2   : > { %s1769_s15 = sld [smem:[#allocation25_spill]]  ;;  %s1771_s28 = smov %s1400_s29 }
 0x3a7   : > { %p30_p4 = scmp.ge.s32.totalorder %s1768_s30, 4  }
 0x3a8   : > { %s1772_s29 = smov %s1769_s15 }
 0x3a9   :  { %32 = sbr.rel (!%p30_p4) target bundleno = 17 (0x11), region = 150 }
 0x3ae   :  { %745 = vsyncpa [#allocation3], 1 }
 0x3af   :  { %747 = vsyncpa [#allocation3 + $0x1], 1 }
 0x3b0   :  { %748 = vsyncpa [#allocation6], 1 }
 0x3b1   :  { %750 = vsyncpa [#allocation6 + $0x1], 1 }
 0x3b2   :  { %751 = vsyncpa [#allocation9], 1 }
 0x3b3   :  { %752 = vsyncpa [#allocation12], 1 }
 0x3b4   :  { %753 = vsyncpa [#allocation4], 1 }
 0x3b5   :  { %755 = vsyncpa [#allocation4 + $0x1], 1 }
 0x3b6   :  { %756 = vsyncpa [#allocation16], 1 }
 0x3b7   :  { %758 = vsyncpa [#allocation16 + $0x1], 1 }

</bundles_post_ra>
